<compile_context>
chip_gen: v6e
topology: v6e:2x2x1
jax: 0.10.0
libtpu: 0.0.40
codegen_flags: <defaults>
</compile_context>

<pallas_src>
import math

import jax
import jax.numpy as jnp
from jax.experimental import pallas as pl
from jax.experimental.pallas import tpu as pltpu


def _round_up(x, m):
    return ((x + m - 1) // m) * m


def _vmem_capacity_bytes():
    """Best-effort per-core VMEM capacity (generation aware); v7x-safe fallback."""
    try:
        info = pltpu.get_tpu_info()
        cap = int(getattr(info, "vmem_capacity_bytes", 0) or 0)
        if cap > 0:
            return cap
    except Exception:
        pass
    return 64 * 1024 * 1024          # v7x has 64 MiB per TensorCore


def _patch_embed_kernel(xm_ref, xt_ref, w_ref, b_ref, tp_ref, xo_ref, to_ref):
    """One (batch b, patch-tile j) grid step.

    xm_ref : (1, tile_n, S*D)    xr rows [j*tile_n, (j+1)*tile_n)           (bf16)
    xt_ref : (1, tail,  S*D)     xr rows [(j+1)*tile_n, (j+1)*tile_n+tail)  (bf16)
    w_ref  : (G*S*D, D)          fused conv weight (VMEM resident, bf16)
    b_ref  : (1, D)              conv bias (f32)
    tp_ref : (1, P, tile_n*Dt)   time windows, window axis on sublanes (f32)
    xo_ref : (1, tile_n, D)      projected patches (f32)
    to_ref : (1, 1, tile_n*Dt)   window means, lane-dense (f32)
    """
    tile_n = xm_ref.shape[1]
    sd = xm_ref.shape[2]
    n_taps = w_ref.shape[0] // sd

    main = xm_ref[0]                                        # (tile_n, sd)
    if n_taps > 1:
        # tap g needs rows [g, g + tile_n) of the (main ++ tail) window
        rows = jnp.concatenate([main, xt_ref[0]], axis=0)   # (tile_n + tail, sd)
        lhs = jnp.concatenate(
            [rows[g:g + tile_n, :] for g in range(n_taps)], axis=-1)
    else:
        lhs = main                                          # (tile_n, G*sd)

    # One fused MXU matmul: K = G*S*D, f32 accumulation.
    acc = jnp.dot(lhs, w_ref[...], preferred_element_type=jnp.float32)
    xo_ref[0] = (acc + b_ref[...]).astype(xo_ref.dtype)

    # time-window mean: sublane reduction over P, unmasked full-lane store.
    to_ref[0] = jnp.mean(tp_ref[0], axis=0, keepdims=True).astype(to_ref.dtype)


def patch_embedding(x, time, weight, bias, patch_len, stride, *,
                    max_tile=4096, compute_dtype=jnp.bfloat16):
    """Pallas-TPU equivalent of PatchEmbedding.forward(x, time).

    x:      (B, L, D)   float32
    time:   (B, L, Dt)  float32
    weight: (D, D, patch_len)  Conv1d weight (out, in, k)
    bias:   (D,)
    returns (x_patch (B, n_patches, D) f32, time_patch (B, n_patches, Dt) f32)
    """
    x = jnp.asarray(x, jnp.float32)
    time = jnp.asarray(time, jnp.float32)
    weight = jnp.asarray(weight, jnp.float32)
    bias = jnp.asarray(bias, jnp.float32)

    B, L, D = x.shape
    _, _, Dt = time.shape
    P, S = int(patch_len), int(stride)

    n_patches = math.ceil((L - P + 1) / S)
    assert n_patches >= 1, "sequence shorter than patch_len"
    G = -(-P // S)                                   # taps per patch
    sd = S * D
    x_bytes = jnp.dtype(compute_dtype).itemsize

    # tail rows covering the (G-1)-row overlap; respect the packed sublane tile
    sublane_mult = 8 * max(1, 4 // x_bytes)          # 8 for f32, 16 for bf16
    tail_rows = _round_up(max(G - 1, 1), sublane_mult)
    unit = math.lcm(128, tail_rows)                  # tile_n granularity (mult of 128)

    # ---- generation-aware tile sizing --------------------------------------
    vmem_cap = _vmem_capacity_bytes()
    per_row = (2 * sd * x_bytes                      # main x block (double buffered)
               + 2 * P * Dt * 4                      # time-window block
               + 2 * D * 4                           # x_patch out block
               + 2 * Dt * 4)                         # time_patch out block
    fixed = (2 * tail_rows * sd * x_bytes + 2 * G * sd * D * x_bytes
             + 2 * D * 4 + (1 << 20))
    budget = max(1 << 20, int(0.35 * vmem_cap) - fixed)
    cap_rows = max(unit, (budget // per_row) // unit * unit)
    tile_cap = max(unit, min(_round_up(max_tile, unit), cap_rows))
    if B == 1 and n_patches > unit:
        # keep >= 2 tiles so both v7x TensorCores get work
        tile_cap = min(tile_cap, max(unit, _round_up(-(-n_patches // 2), unit)))

    if n_patches <= tile_cap:
        tile_n = _round_up(n_patches, unit)
    else:
        n_tiles0 = -(-n_patches // tile_cap)
        tile_n = _round_up(-(-n_patches // n_tiles0), unit)
    n_tiles = -(-n_patches // tile_n)
    n_pp = n_tiles * tile_n
    tail_blocks = tile_n // tail_rows                # exact: unit = lcm(128, tail_rows)

    # ---- x: fold the stride into the feature dim (free reshape), pad L -----
    lr_pad = n_pp + tail_rows
    l_pad_x = lr_pad * S
    x_c = x.astype(compute_dtype)
    if l_pad_x >= L:
        x_c = jnp.pad(x_c, ((0, 0), (0, l_pad_x - L), (0, 0)))
    else:                                            # not hit in practice
        x_c = x_c[:, :l_pad_x, :]
    xr = x_c.reshape(B, lr_pad, sd)                  # xr[b,m,s*D+i] = x[b,m*S+s,i]

    # ---- conv weight -> fused (G*S*D, D); zero-pad kernel taps up to G*S ----
    k_pad = G * S
    w_p = jnp.pad(weight, ((0, 0), (0, 0), (0, k_pad - P))) if k_pad > P else weight
    # row index g*sd + s*D + i  <->  W[o, i, g*S + s]
    w_mat = jnp.transpose(w_p, (2, 1, 0)).reshape(G * sd, D).astype(compute_dtype)
    b_row = bias.reshape(1, D)

    # ---- time windows, lane-dense: (B, P, n_pp*Dt), window axis on sublanes -
    lt_need = (n_pp - 1) * S + P
    pad_t = max(0, lt_need - L)
    time_p = jnp.pad(time, ((0, 0), (0, pad_t), (0, 0))) if pad_t > 0 else time
    idx = jnp.arange(n_pp)[:, None] * S + jnp.arange(P)[None, :]     # (n_pp, P)
    t_unf = time_p[:, idx, :]                                        # (B,n_pp,P,Dt)
    tp = jnp.transpose(t_unf, (0, 2, 1, 3)).reshape(B, P, n_pp * Dt)

    # ---- cost estimate + VMEM limit -----------------------------------------
    flops = 2.0 * B * n_pp * (G * sd) * D
    bytes_accessed = (xr.size * x_bytes + tp.size * 4 + w_mat.size * x_bytes
                      + b_row.size * 4 + B * n_pp * D * 4 + B * n_pp * Dt * 4)
    cost = pl.CostEstimate(flops=int(flops), transcendentals=0,
                           bytes_accessed=int(bytes_accessed))
    vmem_limit = int(min(0.7 * vmem_cap, 100 * 1024 * 1024))

    xo, to = pl.pallas_call(
        _patch_embed_kernel,
        grid=(B, n_tiles),
        in_specs=[
            # main window of xr rows for this tile (auto double-buffered)
            pl.BlockSpec((1, tile_n, sd), lambda b, j: (b, j, 0)),
            # the next `tail_rows` rows (overlap into the following tile)
            pl.BlockSpec((1, tail_rows, sd),
                         lambda b, j: (b, (j + 1) * tail_blocks, 0)),
            pl.BlockSpec((G * sd, D), lambda b, j: (0, 0)),   # weight, resident
            pl.BlockSpec((1, D), lambda b, j: (0, 0)),        # bias, resident
            pl.BlockSpec((1, P, tile_n * Dt), lambda b, j: (b, 0, j)),
        ],
        out_specs=(
            pl.BlockSpec((1, tile_n, D), lambda b, j: (b, j, 0)),
            pl.BlockSpec((1, 1, tile_n * Dt), lambda b, j: (b, 0, j)),
        ),
        out_shape=(
            jax.ShapeDtypeStruct((B, n_pp, D), jnp.float32),
            jax.ShapeDtypeStruct((B, 1, n_pp * Dt), jnp.float32),
        ),
        compiler_params=pltpu.CompilerParams(
            dimension_semantics=("parallel", "parallel"),
            vmem_limit_bytes=vmem_limit,
        ),
        cost_estimate=cost,
    )(xr, xr, w_mat, b_row, tp)

    x_patch = xo[:, :n_patches, :]
    time_patch = to.reshape(B, n_pp, Dt)[:, :n_patches, :]
    return x_patch, time_patch


def _reference(x, time, weight, bias, patch_len, stride):
    """Pure-JAX reference (XLA conv, HIGHEST precision) mirroring PyTorch."""
    B, L, D = x.shape
    n_patches = math.ceil((L - patch_len + 1) / stride)
    pad_len = (n_patches - 1) * stride + patch_len - L
    if pad_len > 0:
        x = jnp.pad(x, ((0, 0), (0, pad_len), (0, 0)))
        time = jnp.pad(time, ((0, 0), (0, pad_len), (0, 0)))
    x_ncw = jnp.transpose(x, (0, 2, 1))
    y = jax.lax.conv_general_dilated(
        x_ncw, weight, window_strides=(stride,), padding="VALID",
        dimension_numbers=("NCH", "OIH", "NCH"),
        precision=jax.lax.Precision.HIGHEST,
    ) + bias[None, :, None]
    x_patch = jnp.transpose(y, (0, 2, 1))
    starts = jnp.arange(n_patches) * stride
    idx = starts[:, None] + jnp.arange(patch_len)[None, :]
    time_patch = time[:, idx, :].mean(axis=2)
    return x_patch, time_patch


if __name__ == "__main__":
    d_model, patch_len, stride = 32, 4, 2
    B, L, Dt = 2, 16, 1

    key = jax.random.PRNGKey(0)
    kx, kt, kw, kb = jax.random.split(key, 4)
    x = jax.random.normal(kx, (B, L, d_model), dtype=jnp.float32)
    time = jax.random.uniform(kt, (B, L, Dt), dtype=jnp.float32)

    fan_in = d_model * patch_len
    bound = 1.0 / math.sqrt(fan_in)
    weight = jax.random.uniform(
        kw, (d_model, d_model, patch_len), jnp.float32, -bound, bound)
    bias = jax.random.uniform(kb, (d_model,), jnp.float32, -bound, bound)

    def check(xv, tv, w, b, P, S, **kw_):
        xp, tpch = patch_embedding(xv, tv, w, b, P, S, **kw_)
        jax.block_until_ready((xp, tpch))
        # compare against a reference fed the same bf16-rounded x / weight so
        # the check isolates kernel-vs-XLA differences (f32 accumulate on both)
        x_q = xv.astype(jnp.bfloat16).astype(jnp.float32)
        w_q = w.astype(jnp.bfloat16).astype(jnp.float32)
        xr_, tr_ = _reference(x_q, tv, w_q, b, P, S)
        assert xp.shape == xr_.shape and tpch.shape == tr_.shape
        assert jnp.allclose(xp, xr_, atol=2e-3, rtol=2e-3), \
            float(jnp.max(jnp.abs(xp - xr_)))
        assert jnp.allclose(tpch, tr_, atol=1e-5, rtol=1e-5), \
            float(jnp.max(jnp.abs(tpch - tr_)))

    # small case (single tile)
    check(x, time, weight, bias, patch_len, stride)

    # longer sequence: exercises the multi-tile + tail-overlap path
    L2 = 1100
    x2 = jax.random.normal(kx, (B, L2, d_model), dtype=jnp.float32)
    t2 = jax.random.uniform(kt, (B, L2, Dt), dtype=jnp.float32)
    check(x2, t2, weight, bias, patch_len, stride, max_tile=256)

    # stride == patch_len (single tap, G == 1 path)
    check(x, time, weight, bias, patch_len, patch_len)

    print("KERNEL_OK")
</pallas_src>

<mosaic_0001>
module attributes {stable_mosaic.version = 11 : i64} {
  func.func @_patch_embed_kernel(%arg0: i32, %arg1: i32, %arg2: memref<1x128x64xbf16, #tpu.memory_space<vmem>>, %arg3: memref<1x16x64xbf16, #tpu.memory_space<vmem>>, %arg4: memref<128x32xbf16, #tpu.memory_space<vmem>>, %arg5: memref<1x32xf32, #tpu.memory_space<vmem>>, %arg6: memref<1x4x128xf32, #tpu.memory_space<vmem>>, %arg7: memref<1x128x32xf32, #tpu.memory_space<vmem>>, %arg8: memref<1x1x128xf32, #tpu.memory_space<vmem>>) attributes {dimension_semantics = [#tpu.dimension_semantics<parallel>, #tpu.dimension_semantics<parallel>], iteration_bounds = array<i64: 2, 1>, scalar_prefetch = 0 : i64, scratch_operands = 0 : i64, tpu.core_type = #tpu.core_type<tc>, window_params = [{transform_indices = @transform_0, window_bounds = array<i64: 1, 128, 64>}, {transform_indices = @transform_1, window_bounds = array<i64: 1, 16, 64>}, {pipeline_mode = #tpu.pipeline_mode<synchronous>, transform_indices = @transform_2, window_bounds = array<i64: 128, 32>}, {pipeline_mode = #tpu.pipeline_mode<synchronous>, transform_indices = @transform_3, window_bounds = array<i64: 1, 32>}, {transform_indices = @transform_4, window_bounds = array<i64: 1, 4, 128>}, {transform_indices = @transform_5, window_bounds = array<i64: 1, 128, 32>}, {transform_indices = @transform_6, window_bounds = array<i64: 1, 1, 128>}]} {
    %c0 = arith.constant 0 : index
    %c0_0 = arith.constant 0 : index
    %c0_1 = arith.constant 0 : index
    %0 = vector.load %arg2[%c0, %c0_0, %c0_1] : memref<1x128x64xbf16, #tpu.memory_space<vmem>>, vector<1x128x64xbf16>
    %1 = vector.shape_cast %0 : vector<1x128x64xbf16> to vector<128x64xbf16>
    %c0_2 = arith.constant 0 : index
    %c0_3 = arith.constant 0 : index
    %c0_4 = arith.constant 0 : index
    %2 = vector.load %arg3[%c0_2, %c0_3, %c0_4] : memref<1x16x64xbf16, #tpu.memory_space<vmem>>, vector<1x16x64xbf16>
    %3 = vector.shape_cast %2 : vector<1x16x64xbf16> to vector<16x64xbf16>
    %4 = tpu.concatenate %1, %3 in 0 : vector<128x64xbf16>, vector<16x64xbf16> -> vector<144x64xbf16>
    %5 = vector.extract_strided_slice %4 {offsets = [0, 0], sizes = [128, 64], strides = [1, 1]} : vector<144x64xbf16> to vector<128x64xbf16>
    %6 = vector.extract_strided_slice %4 {offsets = [1, 0], sizes = [128, 64], strides = [1, 1]} : vector<144x64xbf16> to vector<128x64xbf16>
    %7 = tpu.concatenate %5, %6 in 1 : vector<128x64xbf16>, vector<128x64xbf16> -> vector<128x128xbf16>
    %c0_5 = arith.constant 0 : index
    %c0_6 = arith.constant 0 : index
    %8 = vector.load %arg4[%c0_5, %c0_6] : memref<128x32xbf16, #tpu.memory_space<vmem>>, vector<128x32xbf16>
    %cst = arith.constant dense<0.000000e+00> : vector<128x32xf32>
    %9 = tpu.matmul %7, %8, %cst {dimension_numbers = #tpu.dot_dimension_numbers<[1], [0], [0], [1], [0, 0, 1, 1], [], []>} : vector<128x128xbf16>, vector<128x32xbf16>, vector<128x32xf32> -> vector<128x32xf32>
    %c0_7 = arith.constant 0 : index
    %c0_8 = arith.constant 0 : index
    %10 = vector.load %arg5[%c0_7, %c0_8] : memref<1x32xf32, #tpu.memory_space<vmem>>, vector<1x32xf32>
    %11 = vector.broadcast %10 : vector<1x32xf32> to vector<128x32xf32>
    %12 = arith.addf %9, %11 : vector<128x32xf32>
    %c0_9 = arith.constant 0 : index
    %c0_10 = arith.constant 0 : index
    %c0_11 = arith.constant 0 : index
    %13 = vector.load %arg7[%c0_9, %c0_10, %c0_11] : memref<1x128x32xf32, #tpu.memory_space<vmem>>, vector<1x128x32xf32>
    %14 = vector.shape_cast %13 : vector<1x128x32xf32> to vector<128x32xf32>
    %15 = vector.shape_cast %12 : vector<128x32xf32> to vector<1x128x32xf32>
    tpu.vector_store %arg7[%c0_9, %c0_10, %c0_11], %15 {strides = array<i32>} : memref<1x128x32xf32, #tpu.memory_space<vmem>>, vector<1x128x32xf32>,
    %c0_12 = arith.constant 0 : index
    %c0_13 = arith.constant 0 : index
    %c0_14 = arith.constant 0 : index
    %16 = vector.load %arg6[%c0_12, %c0_13, %c0_14] : memref<1x4x128xf32, #tpu.memory_space<vmem>>, vector<1x4x128xf32>
    %17 = vector.shape_cast %16 : vector<1x4x128xf32> to vector<4x128xf32>
    %cst_15 = arith.constant dense<0.000000e+00> : vector<128xf32>
    %18 = vector.multi_reduction <add>, %17, %cst_15 [0] : vector<4x128xf32> to vector<128xf32>
    %19 = vector.shape_cast %18 : vector<128xf32> to vector<1x128xf32>
    %cst_16 = arith.constant 4.000000e+00 : f32
    %20 = vector.broadcast %cst_16 : f32 to vector<1x128xf32>
    %21 = arith.divf %19, %20 : vector<1x128xf32>
    %c0_17 = arith.constant 0 : index
    %c0_18 = arith.constant 0 : index
    %c0_19 = arith.constant 0 : index
    %22 = vector.load %arg8[%c0_17, %c0_18, %c0_19] : memref<1x1x128xf32, #tpu.memory_space<vmem>>, vector<1x1x128xf32>
    %23 = vector.shape_cast %22 : vector<1x1x128xf32> to vector<1x128xf32>
    %24 = vector.shape_cast %21 : vector<1x128xf32> to vector<1x1x128xf32>
    tpu.vector_store %arg8[%c0_17, %c0_18, %c0_19], %24 {strides = array<i32>} : memref<1x1x128xf32, #tpu.memory_space<vmem>>, vector<1x1x128xf32>,
    return
  }
  func.func @transform_0(%arg0: i32, %arg1: i32) -> (i32, i32, i32) {
    %c0_i32 = arith.constant 0 : i32
    %c0_i32_0 = arith.constant 0 : i32
    return %arg0, %arg1, %c0_i32 : i32, i32, i32
  }
  func.func @transform_1(%arg0: i32, %arg1: i32) -> (i32, i32, i32) {
    %c1_i32 = arith.constant 1 : i32
    %0 = arith.addi %arg1, %c1_i32 : i32
    %c8_i32 = arith.constant 8 : i32
    %1 = arith.muli %0, %c8_i32 : i32
    %c0_i32 = arith.constant 0 : i32
    %c0_i32_0 = arith.constant 0 : i32
    return %arg0, %1, %c0_i32 : i32, i32, i32
  }
  func.func @transform_2(%arg0: i32, %arg1: i32) -> (i32, i32) {
    %c0_i32 = arith.constant 0 : i32
    %c0_i32_0 = arith.constant 0 : i32
    %c0_i32_1 = arith.constant 0 : i32
    return %c0_i32, %c0_i32_0 : i32, i32
  }
  func.func @transform_3(%arg0: i32, %arg1: i32) -> (i32, i32) {
    %c0_i32 = arith.constant 0 : i32
    %c0_i32_0 = arith.constant 0 : i32
    %c0_i32_1 = arith.constant 0 : i32
    return %c0_i32, %c0_i32_0 : i32, i32
  }
  func.func @transform_4(%arg0: i32, %arg1: i32) -> (i32, i32, i32) {
    %c0_i32 = arith.constant 0 : i32
    %c0_i32_0 = arith.constant 0 : i32
    return %arg0, %c0_i32, %arg1 : i32, i32, i32
  }
  func.func @transform_5(%arg0: i32, %arg1: i32) -> (i32, i32, i32) {
    %c0_i32 = arith.constant 0 : i32
    %c0_i32_0 = arith.constant 0 : i32
    return %arg0, %arg1, %c0_i32 : i32, i32, i32
  }
  func.func @transform_6(%arg0: i32, %arg1: i32) -> (i32, i32, i32) {
    %c0_i32 = arith.constant 0 : i32
    %c0_i32_0 = arith.constant 0 : i32
    return %arg0, %c0_i32, %arg1 : i32, i32, i32
  }
}

</mosaic_0001>

<bundles_post_ra>
// kernel: tpu_custom_call.1
= control target key start
LH: loop header
LB: loop body
LE: loop exit
PB: predicated region body
PF: predicated region fallthrough
CT: control target
= control target key end

     0   :  { %12 = vsyncpa [#allocation3], 0  ;;  %s1479_s0 = inlined_call_operand.vmem [shape: bf16[2,144,64], index: 0, kind: input, shape index: {}]   ;;  %s1480_s1 = inlined_call_operand.vmem [shape: bf16[2,144,64], index: 1, kind: input, shape index: {}]   ;;  %s1481_s2 = inlined_call_operand.vmem [shape: bf16[128,32], index: 2, kind: input, shape index: {}]   ;;  %s1482_s3 = inlined_call_operand.vmem [shape: f32[1,32], index: 3, kind: input, shape index: {}]   ;;  %s1483_s4 = inlined_call_operand.vmem [shape: f32[2,4,128], index: 4, kind: input, shape index: {}]   ;;  %s1484_s5 = inlined_call_operand.vmem [shape: f32[2,128,32], index: 5, kind: output, shape index: {0}]   ;;  %s1485_s6 = inlined_call_operand.hbm [shape: f32[2,1,128], index: 6, kind: output, shape index: {1}]  }
   0x1   :  { %14 = vsyncpa [#allocation3 + $0x1], 0  ;;  %s1228_s21 = smov 0   ;;  %s1230_s22 = smov 0  }
   0x2   :  { %s1232_s23 = smov 0   ;;  %s1234_s24 = smov 0  }
   0x3   :  { %s1236_s25 = smov 0   ;;  %s1238_s26 = smov 0  }
   0x4 LB: > { %s939_s27 = sadd.s32 4294967295, %s1189_s26   ;;  %s940_s28 = sadd.s32 4294967294, %s1189_s26   ;;  %s1189_s26 = sphi %s1238_s26, %s20_s26   ;;  %s1185_s25 = sphi %s1236_s25, %s1492_s25   ;;  %s1181_s24 = sphi %s1234_s24, %s1491_s24   ;;  %s1177_s23 = sphi %s1232_s23, %s1490_s23   ;;  %s1173_s22 = sphi %s1230_s22, %s1489_s22   ;;  %s1169_s21 = sphi %s1228_s21, %s1488_s21  }
   0x5   : > { %s32_s29 = sadd.s32 1, %s1185_s25  ;;  %s199_s30 = sadd.s32 1, %s1177_s23 }
   0x6   : > { %p34_p0 = scmp.ge.s32.totalorder %s32_s29, 2  ;;  %p209_p1 = scmp.ne.s32.totalorder %s1177_s23, %s1173_s22 }
   0x7   : > { %p210_p2 = scmp.eq.s32.totalorder %s939_s27, 1  ;;  %p215_p3 = scmp.ne.s32.totalorder %s1173_s22, %s1169_s21 }
   0x8   : > { %s1494_s29 = smov (%p34_p0, %s32_s29), 0  ;;  %p216_p5 = scmp.eq.s32.totalorder %s940_s28, 1 }
   0x9   : > { %p1268_p4 = por %p210_p2, %p209_p1  ;;  %s194_s8 = ssub.s32 %s1185_s25, %s1494_s29 }
   0xa   : > { %p943_p6 = scmp.ge.s32.totalorder %s1189_s26, 1  ;;  %p197_p7 = scmp.eq.s32.totalorder %s194_s8, 0 }
   0xb   : > { %p1275_p8 = por %p216_p5, %p215_p3  ;;  %p288_p9 = scmp.lt.s32.totalorder %s1189_s26, 3 }
   0xc   : > { %s1281_s10 = scalar_select %p197_p7, %s1177_s23, %s199_s30  }
   0xd   : > { %p289_p10 = pnand %p943_p6, %p288_p9 }
   0xe   : > { %p357_p11 = scmp.lt.s32.totalorder (!%p289_p10), %s1181_s24, 1  ;;  %s1191_s19 = smov (!%p289_p10), 64  }
   0xf   : > { %292 = sbr.rel (%p289_p10) target bundleno = 364 (0x16c), region = 40  ;;  %s350_s15 = sand.u32 (!%p289_p10), 1, %s1173_s22  }
  0x10   : > { %s351_s17 = scalar_lea.vmem (!%p289_p10), [#allocation2], %s350_s15  ;;  %s782_s28 = scalar_lea.sflag (!%p289_p10), [#allocation3], %s350_s15 }
  0x11   : > { %s799_s18 = sshll.u32 (!%p289_p10), %s351_s17, 4  ;;  %s800_s18 = int_to_ptr.vmem [resolvable:$true] %s799_s18 }
  0x12   : > { %s1113_s30 = scalar_lea.vmem (!%p289_p10), %s800_s18, 16 }
  0x13   : > { %p1114_p12 = scmp.ne.s32.totalorder (!%p289_p10), %s800_s18, %s1113_s30 }
  0x14   : > { %v1105_v0 = vld [vmem:[%s1481_s2 + $0x38] sm:$0xff]   ;;  %s1288_s13 = scalar_select %p357_p11, %s1181_s24, 1  ;;  %v1106_v1 = vld [vmem:[%s1481_s2 + $0x30] sm:$0xff]   ;;  %v1107_v2 = vld [vmem:[%s1481_s2 + $0x28] sm:$0xff]   ;;  %vm465_vm0 = vsmask.f32 7424 }
  0x15   : > { %989 = vmatprep.subr.bf16.mxu0 %v1105_v0  ;;  %1021 = vmatprep.subr.bf16.mxu1 %v1105_v0  ;;  %v1108_v3 = vld [vmem:[%s1481_s2 + $0x20] sm:$0xff]   ;;  %v1109_v17 = vld [vmem:[%s1481_s2 + $0x18] sm:$0xff]   ;;  %v1110_v34 = vld [vmem:[%s1481_s2 + $0x10] sm:$0xff]   ;;  %vm550_vm1 = vcmask 523264   ;;  %vm761_vm2 = vcmask 1043456   ;;  %p1115_p13 = pnand %p1114_p12, %p1268_p4 }
  0x16   : > { %s1037_s16 = smul.u32 72, %s1288_s13  ;;  %990 = vmatpush3.bf16.msra.mxu0 %v1105_v0  ;;  %1029 = vmatpush3.bf16.msra.mxu1 %v1105_v0  ;;  %v1111_v54 = vld [vmem:[%s1481_s2 + $0x8] sm:$0xff]   ;;  %v1112_v58 = vld [vmem:[%s1481_s2] sm:$0xff]  }
  0x17   : > { %991 = vmatprep.subr.bf16.mxu0 %v1106_v1  ;;  %1022 = vmatprep.subr.bf16.mxu1 %v1106_v1  ;;  %p1116_p0 = pneg %p1115_p13 }
  0x18   : > { %s1300_s27 = scalar_lea.vmem %s1479_s0, %s1037_s16  ;;  %s1314_s8 = sadd.s32 64, %s1037_s16 }
  0x19   : > { %v1306_v4 = vld [vmem:[%s1300_s27] sm:$0xff]   ;;  %v1309_v5 = vld [vmem:[%s1300_s27 + $0x8] sm:$0xff]   ;;  %v1312_v6 = vld [vmem:[%s1300_s27 + $0x10] sm:$0xff]   ;;  %s380_s16 = scalar_lea.vmem %s1480_s1, %s1314_s8  ;;  %s946_s8 = sshll.u32 %s1288_s13, 2 }
  0x1a   : > { %992 = vmatpush3.bf16.msra.mxu0 %v1106_v1  ;;  %1030 = vmatpush3.bf16.msra.mxu1 %v1106_v1  ;;  %v467_v7 = vshrl.u32 %v1306_v4, 16  ;;  %v469_v8 = vshll.u32 %v1306_v4, 16  ;;  %v474_v9 = vshll.u32 %v1309_v5, 16  ;;  %v478_v10 = vshrl.u32 %v1309_v5, 16  ;;  %v1322_v12 = vld [vmem:[%s1300_s27 + $0x20] sm:$0xff]   ;;  %v1325_v15 = vld [vmem:[%s1300_s27 + $0x28] sm:$0xff]   ;;  %s390_s14 = scalar_lea.vmem %s1483_s4, %s946_s8 }
  0x1b   : > { %993 = vmatprep.subr.bf16.mxu0 %v1107_v2  ;;  %1023 = vmatprep.subr.bf16.mxu1 %v1107_v2  ;;  %v482_v11 = vshll.u32 %v1312_v6, 16  ;;  %v1328_v16 = vld [vmem:[%s1300_s27 + $0x30] sm:$0xff]   ;;  %v498_v19 = vshll.u32 %v1322_v12, 16  ;;  %v502_v20 = vshrl.u32 %v1322_v12, 16  ;;  %v1336_v21 = vld [vmem:[%s1300_s27 + $0x18] sm:$0xff]   ;;  %v506_v24 = vshll.u32 %v1325_v15, 16 }
  0x1c   : > { %v471_v13 = vrot.slane %v469_v8, 1  ;;  %v476_v14 = vrot.slane %v474_v9, 1  ;;  %v510_v25 = vshrl.u32 %v1325_v15, 16  ;;  %v514_v27 = vshll.u32 %v1328_v16, 16  ;;  %v1350_v33 = vld [vmem:[%s1300_s27 + $0x38] sm:$0xff]   ;;  %v1104_v43 = vld [vmem:[%s380_s16] sm:$0xff]  }
  0x1d   : > { %v484_v18 = vrot.slane %v482_v11, 1  ;;  %v500_v26 = vrot.slane %v498_v19, 1  ;;  %v486_v28 = vshrl.u32 %v1312_v6, 16  ;;  %v490_v29 = vshll.u32 %v1336_v21, 16  ;;  %s967_s16 = sshll.u32 %s1181_s24, 4  ;;  %s1192_s8 = smov [#allocation2]  }
  0x1e   : > { %994 = vmatpush3.bf16.msra.mxu0 %v1107_v2  ;;  %1031 = vmatpush3.bf16.msra.mxu1 %v1107_v2  ;;  %v472_v22 = vor.u32 %v471_v13, %v467_v7  ;;  %v480_v23 = vor.u32 %v478_v10, %v476_v14  ;;  %v508_v32 = vrot.slane %v506_v24, 1  ;;  %v516_v36 = vrot.slane %v514_v27, 1  ;;  %s797_s27 = scalar_lea.hbm %s1485_s6, %s967_s16  ;;  %s1117_s11 = sshll.u32 %s1192_s8, 4  ;;  %s1118_s11 = int_to_ptr.vmem [resolvable:$false] %s1117_s11 }
  0x1f   : > { %995 = vmatprep.subr.bf16.mxu0 %v1108_v3  ;;  %1024 = vmatprep.subr.bf16.mxu1 %v1108_v3  ;;  %v504_v35 = vor.u32 %v502_v20, %v500_v26  ;;  %v488_v37 = vor.u32 %v486_v28, %v484_v18  ;;  %v492_v38 = vrot.slane %v490_v29, 1  ;;  %v518_v40 = vshrl.u32 %v1328_v16, 16  ;;  %s1119_s12 = scalar_lea.vmem %s1118_s11, 32  ;;  %p1120_p1 = scmp.lt.s32.totalorder %s800_s18, %s1118_s11 }
  0x20   : > { %v477_v30 = vsel %vm465_vm0, %v472_v22, %v476_v14  ;;  %v485_v31 = vsel %vm465_vm0, %v480_v23, %v484_v18  ;;  %v512_v39 = vor.u32 %v510_v25, %v508_v32  ;;  %v522_v41 = vshll.u32 %v1350_v33, 16  ;;  %p1121_p2 = scmp.lt.s32.totalorder %s1119_s12, %s1113_s30 }
  0x21   : > { %534 = vrot.lane.b32.xlu0 %v477_v30, %s1191_s19  ;;  %536 = vrot.lane.b32.xlu1 %v485_v31, %s1191_s19  ;;  %v494_v42 = vshrl.u32 %v1336_v21, 16  ;;  %v509_v44 = vsel %vm465_vm0, %v504_v35, %v508_v32  ;;  %v526_v45 = vshrl.u32 %v1350_v33, 16  ;;  %v520_v47 = vor.u32 %v518_v40, %v516_v36 }
  0x22   : > { %996 = vmatpush3.bf16.msra.mxu0 %v1108_v3  ;;  %1032 = vmatpush3.bf16.msra.mxu1 %v1108_v3  ;;  %v517_v46 = vsel %vm465_vm0, %v512_v39, %v516_v36  ;;  %v524_v48 = vrot.slane %v522_v41, 1  ;;  %v493_v49 = vsel %vm465_vm0, %v488_v37, %v492_v38  ;;  %v530_v50 = vshll.u32 %v1104_v43, 16  ;;  %p1122_p3 = por %p1121_p2, %p1120_p1 }
  0x23   : > { %997 = vmatprep.subr.bf16.mxu0 %v1109_v17  ;;  %1025 = vmatprep.subr.bf16.mxu1 %v1109_v17  ;;  %v496_v52 = vor.u32 %v494_v42, %v492_v38 }
  0x24   : > { %v525_v51 = vsel %vm465_vm0, %v520_v47, %v524_v48  ;;  %v528_v53 = vor.u32 %v526_v45, %v524_v48  ;;  %v532_v55 = vrot.slane %v530_v50, 1  ;;  %p1123_p5 = pnand %p1122_p3, %p1116_p0 }
  0x25   : > { %542 = vrot.lane.b32.xlu0 %v509_v44, %s1191_s19  ;;  %544 = vrot.lane.b32.xlu1 %v517_v46, %s1191_s19  ;;  %v501_v56 = vsel %vm465_vm0, %v496_v52, %v500_v26 }
  0x26   : > { %998 = vmatpush3.bf16.msra.mxu0 %v1109_v17  ;;  %1033 = vmatpush3.bf16.msra.mxu1 %v1109_v17  ;;  %v533_v57 = vsel %vm465_vm0, %v528_v53, %v532_v55 }
  0x27   : > { %999 = vmatprep.subr.bf16.mxu0 %v1110_v34  ;;  %1026 = vmatprep.subr.bf16.mxu1 %v1110_v34 }
  0x29   : > { %538 = vrot.lane.b32.xlu0 %v493_v49, %s1191_s19  ;;  %546 = vrot.lane.b32.xlu1 %v525_v51, %s1191_s19 }
  0x2a   : > { %1000 = vmatpush3.bf16.msra.mxu0 %v1110_v34  ;;  %1034 = vmatpush3.bf16.msra.mxu1 %v1110_v34 }
  0x2b   : > { %1001 = vmatprep.subr.bf16.mxu0 %v1111_v54  ;;  %1027 = vmatprep.subr.bf16.mxu1 %v1111_v54 }
  0x2d   : > { %540 = vrot.lane.b32.xlu0 %v501_v56, %s1191_s19  ;;  %548 = vrot.lane.b32.xlu1 %v533_v57, %s1191_s19 }
  0x2e   : > { %1002 = vmatpush3.bf16.msra.mxu0 %v1111_v54  ;;  %1035 = vmatpush3.bf16.msra.mxu1 %v1111_v54 }
  0x2f   : > { %1003 = vmatprep.subr.bf16.mxu0 %v1112_v58  ;;  %1028 = vmatprep.subr.bf16.mxu1 %v1112_v58 }
  0x32   : > { %1004 = vmatpush3.bf16.msra.mxu0 %v1112_v58  ;;  %1036 = vmatpush3.bf16.msra.mxu1 %v1112_v58 }
  0x93   : > { %v535_v59 = vpop.permute.xlu0 %534  ;;  %v537_v60 = vpop.permute.xlu1 %536 }
  0x94   : > { %v552_v61 = vsel %vm550_vm1, %v1306_v4, %v535_v59  ;;  %v555_v62 = vsel %vm550_vm1, %v1309_v5, %v537_v60 }
  0x95   : > { %1005 = vmatprep.mubr.bf16.mxu0 %v552_v61 }
  0x96   : > { %1006 = vmatmul.mubr.bf16.vlgmr.msra.gmra.mxu0 %v555_v62 }
  0x97   : > { %v543_v63 = vpop.permute.xlu0 %542  ;;  %v545_v0 = vpop.permute.xlu1 %544 }
  0x98   : > { %v564_v1 = vsel %vm550_vm1, %v1322_v12, %v543_v63  ;;  %v567_v2 = vsel %vm550_vm1, %v1325_v15, %v545_v0 }
  0x99   : > { %1013 = vmatprep.mubr.bf16.mxu1 %v564_v1 }
  0x9a   : > { %1014 = vmatmul.mubr.bf16.vlgmr.msra.gmra.mxu1 %v567_v2 }
  0x9b   : > { %v539_v3 = vpop.permute.xlu0 %538  ;;  %v547_v7 = vpop.permute.xlu1 %546 }
  0x9c   : > { %v558_v4 = vsel %vm550_vm1, %v1312_v6, %v539_v3  ;;  %v570_v5 = vsel %vm550_vm1, %v1328_v16, %v547_v7  ;;  %v760_v6 = vld [vmem:[%s390_s14] sm:$0xf] }
  0x9d   : > { %1009 = vmatprep.mubr.bf16.mxu0 %v558_v4  ;;  %1017 = vmatprep.mubr.bf16.mxu1 %v570_v5  ;;  %v762_v12 = vsel %vm761_vm2, %v760_v6, 0.0 }
  0x9e   : > { %v763_v13 = vrot.slane %v762_v12, 4 }
  0x9f   : > { %v541_v8 = vpop.permute.xlu0 %540  ;;  %v549_v9 = vpop.permute.xlu1 %548 }
  0xa0   : > { %v561_v10 = vsel %vm550_vm1, %v1336_v21, %v541_v8  ;;  %v573_v11 = vsel %vm550_vm1, %v1350_v33, %v549_v9  ;;  %v764_v14 = vadd.f32 %v763_v13, %v762_v12 }
  0xa1   : > { %1010 = vmatmul.mubr.bf16.gmra.mxu0 %v561_v10 }
  0xa2   : > { %1018 = vmatmul.mubr.bf16.gmra.mxu1 %v573_v11  ;;  %v765_v15 = vrot.slane %v764_v14, 2 }
  0xa4   : > { %v766_v16 = vadd.f32 %v765_v15, %v764_v14 }
  0xa6   : > { %v767_v17 = vrot.slane %v766_v16, 1 }
  0xa8   : > { %v768_v18 = vadd.f32 %v767_v17, %v766_v16 }
  0xaa   : > { %v770_v19 = vmul.f32 0.25, %v768_v18 }
  0xac   : > { %771 = vst [vmem:[%s351_s17] sm:$0x1] %v770_v19 }
  0xad   : > { %1126 = shalt.err (!%p1123_p5)
}
  0xae   : > { %s1127_s24 = scalar_lea.hbm %s797_s27, 16  ;;  %s1131_s16 = scalar_lea.hbm %s1485_s6, 32 }
  0xaf   : > { %p1128_p6 = scmp.ne.s32.totalorder %s797_s27, %s1127_s24  ;;  %p1132_p10 = scmp.lt.s32.totalorder %s797_s27, %s1485_s6 }
  0xb0   : > { %p1133_p11 = scmp.lt.s32.totalorder %s1131_s16, %s1127_s24 }
  0xb1   : > { %p1129_p7 = pnand %p1128_p6, %p1268_p4 }
  0xb2   : > { %p1134_p12 = por %p1133_p11, %p1132_p10 }
  0xb3   : > { %p1130_p9 = pneg %p1129_p7 }
  0xb5   : > { %p1135_p13 = pnand %p1134_p12, %p1130_p9 }
  0xb7   : > { %1138 = shalt.err (!%p1135_p13)
}
  0xb8   : > { %1039 = dma.vmem_to_hbm [thread:$0]  (%p1268_p4), %s800_s18, 16, %s797_s27, %s782_s28   ;;  %v958_v20 = vld [vmem:[%s1482_s3] ss:$0 sm:$0xff]  ;;  %vm743_vm3 = vcmask 261120  }
  0xb9   : > { %s972_s20 = sshll.u32 %s1288_s13, 7 }
  0xba   : > { %s1423_s14 = scalar_lea.vmem %s1484_s5, %s972_s20 }
 0x156   : > { %v1007_v21 = vpop.f32.mrf.mxu0 }
 0x157   : > { %v689_v22 = vadd.f32 %v1007_v21, %v958_v20 }
 0x158   : > { %v680_v23 = vpop.f32.mrf.mxu0 }
 0x159   : > { %746 = vst.msk [vmem:[%s1423_s14 + $0x10] sm:$0xff] %vm743_vm3, %v689_v22  ;;  %v681_v24 = vadd.f32 %v958_v20, %v680_v23 }
 0x15a   : > { %v1008_v25 = vpop.f32.mrf.mxu0  ;;  %v1015_v26 = vpop.f32.mrf.mxu1 }
 0x15b   : > { %744 = vst.msk [vmem:[%s1423_s14] sm:$0xff] %vm743_vm3, %v681_v24  ;;  %v692_v27 = vadd.f32 %v1008_v25, %v958_v20  ;;  %v721_v28 = vadd.f32 %v1015_v26, %v958_v20 }
 0x15c   : > { %v683_v29 = vpop.f32.mrf.mxu0  ;;  %v712_v30 = vpop.f32.mrf.mxu1 }
 0x15d   : > { %747 = vst.msk [vmem:[%s1423_s14 + $0x18] sm:$0xff] %vm743_vm3, %v692_v27  ;;  %754 = vst.msk [vmem:[%s1423_s14 + $0x50] sm:$0xff] %vm743_vm3, %v721_v28  ;;  %v684_v31 = vadd.f32 %v958_v20, %v683_v29  ;;  %v713_v32 = vadd.f32 %v958_v20, %v712_v30 }
 0x15e   : > { %v1016_v33 = vpop.f32.mrf.mxu1 }
 0x15f   : > { %745 = vst.msk [vmem:[%s1423_s14 + $0x8] sm:$0xff] %vm743_vm3, %v684_v31  ;;  %752 = vst.msk [vmem:[%s1423_s14 + $0x40] sm:$0xff] %vm743_vm3, %v713_v32  ;;  %v724_v34 = vadd.f32 %v1016_v33, %v958_v20 }
 0x160   : > { %v715_v35 = vpop.f32.mrf.mxu1 }
 0x161   : > { %755 = vst.msk [vmem:[%s1423_s14 + $0x58] sm:$0xff] %vm743_vm3, %v724_v34  ;;  %v716_v36 = vadd.f32 %v958_v20, %v715_v35  ;;  %v1011_v37 = vpop.f32.mrf.mxu0 }
 0x162   : > { %v705_v38 = vadd.f32 %v1011_v37, %v958_v20  ;;  %v1019_v39 = vpop.f32.mrf.mxu1 }
 0x163   : > { %753 = vst.msk [vmem:[%s1423_s14 + $0x48] sm:$0xff] %vm743_vm3, %v716_v36  ;;  %v737_v40 = vadd.f32 %v1019_v39, %v958_v20  ;;  %v696_v41 = vpop.f32.mrf.mxu0 }
 0x164   : > { %750 = vst.msk [vmem:[%s1423_s14 + $0x30] sm:$0xff] %vm743_vm3, %v705_v38  ;;  %v697_v42 = vadd.f32 %v958_v20, %v696_v41  ;;  %v728_v43 = vpop.f32.mrf.mxu1 }
 0x165   : > { %758 = vst.msk [vmem:[%s1423_s14 + $0x70] sm:$0xff] %vm743_vm3, %v737_v40  ;;  %v729_v44 = vadd.f32 %v958_v20, %v728_v43  ;;  %v1012_v45 = vpop.f32.mrf.mxu0 }
 0x166   : > { %748 = vst.msk [vmem:[%s1423_s14 + $0x20] sm:$0xff] %vm743_vm3, %v697_v42  ;;  %v708_v46 = vadd.f32 %v1012_v45, %v958_v20  ;;  %v1020_v47 = vpop.f32.mrf.mxu1 }
 0x167   : > { %756 = vst.msk [vmem:[%s1423_s14 + $0x60] sm:$0xff] %vm743_vm3, %v729_v44  ;;  %v740_v48 = vadd.f32 %v1020_v47, %v958_v20  ;;  %v699_v49 = vpop.f32.mrf.mxu0 }
 0x168   : > { %751 = vst.msk [vmem:[%s1423_s14 + $0x38] sm:$0xff] %vm743_vm3, %v708_v46  ;;  %v700_v50 = vadd.f32 %v958_v20, %v699_v49  ;;  %v731_v51 = vpop.f32.mrf.mxu1 }
 0x169   : > { %759 = vst.msk [vmem:[%s1423_s14 + $0x78] sm:$0xff] %vm743_vm3, %v740_v48  ;;  %v732_v52 = vadd.f32 %v958_v20, %v731_v51 }
 0x16a   : > { %749 = vst.msk [vmem:[%s1423_s14 + $0x28] sm:$0xff] %vm743_vm3, %v700_v50 }
 0x16b   : > { %757 = vst.msk [vmem:[%s1423_s14 + $0x68] sm:$0xff] %vm743_vm3, %v732_v52 }
 0x16c PF: > { %p1046_p4 = scmp.ge.s32.totalorder %s1189_s26, 2  ;;  %s823_s7 = sand.u32 1, %s1169_s21  }
 0x16d   : > { %s824_s13 = scalar_lea.sflag [#allocation3], %s823_s7 }
 0x16e   : > { %p1042_p0 = pnand %p1046_p4, %p1275_p8 }
 0x170   : > { %p1043_p1 = pneg %p1042_p0 }
 0x172   : > { %1164 = dma.done.wait (%p1043_p1), %s824_s13, 16  }
 0x173   : > { %1166 = vsyncadd (%p1043_p1), %s824_s13, 4294967280  ;;  %s20_s26 = sadd.s32 1, %s1189_s26   ;;  %s1488_s21 = smov %s1173_s22 }
 0x174   : > { %p17_p2 = scmp.ge.s32.totalorder %s20_s26, 4   ;;  %s1489_s22 = smov %s1177_s23 }
 0x175   : > { %s1490_s23 = smov %s1281_s10  ;;  %s1491_s24 = smov %s1185_s25 }
 0x176   : > { %s1492_s25 = smov %s1494_s29  ;;  %19 = sbr.rel (!%p17_p2) target bundleno = 4 (0x4), region = 93 }
 0x17b   :  { %828 = vsyncpa [#allocation3], 1 }
 0x17c   :  { %830 = vsyncpa [#allocation3 + $0x1], 1 }

</bundles_post_ra>
